<compile_context>
chip_gen: v6e
topology: v6e:2x2x1
jax: 0.10.0
libtpu: 0.0.40
codegen_flags: <defaults>
</compile_context>

<pallas_src>
import jax
import jax.numpy as jnp
from jax import lax
from jax.experimental import pallas as pl
from jax.experimental.pallas import tpu as pltpu


def _bert_output_kernel(x_ref, res_ref, wt_ref, b_ref, g_ref, beta_ref, o_ref):
    """One row-tile of: dense -> (+bias) -> (+residual) -> LayerNorm(eps=1e-12)."""
    # x_ref:    [tm, I]  row tile of hidden_states (intermediate activations)
    # res_ref:  [tm, H]  row tile of input_tensor (residual branch)
    # wt_ref:   [I, H]   pre-transposed dense weight, resident (single-buffered)
    # b/g/beta: [1, H]
    x = x_ref[...]
    if x.dtype != wt_ref.dtype:
        # bf16 MXU feed when the weight was prepped as bf16 (static dtype check).
        x = x.astype(wt_ref.dtype)
    h = jnp.dot(x, wt_ref[...], preferred_element_type=jnp.float32)
    h = h + b_ref[...].astype(jnp.float32)
    # TODO(synk): dropout is the identity here (eval mode); training-mode dropout
    # would use pltpu.prng_seed + pltpu.stateful_bernoulli.
    h = h + res_ref[...].astype(jnp.float32)

    # BertLayerNorm over the last dim (biased variance), eps=1e-12, all in f32.
    # Two-pass form kept to exactly match the PyTorch BertLayerNorm numerics.
    mu = jnp.mean(h, axis=-1, keepdims=True)
    xc = h - mu
    var = jnp.mean(xc * xc, axis=-1, keepdims=True)
    hn = xc * lax.rsqrt(var + jnp.float32(1e-12))
    out = hn * g_ref[...].astype(jnp.float32) + beta_ref[...].astype(jnp.float32)
    o_ref[...] = out.astype(o_ref.dtype)


def prepare_bert_output_params(params, matmul_dtype=None):
    """One-time parameter prep: transpose [H,I]->[I,H] (and optional bf16 cast).

    Do this once when loading the model, not per forward call, so the weight
    transpose / cast never costs HBM bandwidth on the hot path.
    """
    H = params["dense_w"].shape[0]
    w_t = jnp.transpose(params["dense_w"])  # [I, H], lane-dense for the MXU
    if matmul_dtype is not None:
        w_t = w_t.astype(matmul_dtype)
    return {
        "w_t": w_t,
        "b": params["dense_b"].reshape(1, H),
        "gamma": params["ln_gamma"].reshape(1, H),
        "beta": params["ln_beta"].reshape(1, H),
    }


def _pick_row_tile(n):
    """Largest row tile (multiple of 8, capped at 512) leaving >=2 grid blocks."""
    for tm in (512, 256, 128, 64, 32, 16, 8):
        if tm <= n and pl.cdiv(n, tm) >= 2:
            return tm
    # n <= 8: single block equal to the (tiny) full row extent.
    return n


def _vmem_limit_bytes():
    """Budget scoped VMEM per generation (~75% of capacity, capped at 100 MiB)."""
    try:
        cap = pltpu.get_tpu_info().vmem_capacity_bytes
    except Exception:
        cap = 64 << 20  # conservative fallback (v7x per-TC capacity)
    return int(min(100 << 20, (cap * 3) // 4))


def bert_output(hidden_states, input_tensor, prepped):
    """hidden_states: [B, S, I], input_tensor: [B, S, H] -> [B, S, H]."""
    B, S, I = hidden_states.shape
    H = input_tensor.shape[-1]
    N = B * S

    x = hidden_states.reshape(N, I)
    res = input_tensor.reshape(N, H)

    w_t = prepped["w_t"]       # [I, H]
    b = prepped["b"]           # [1, H]
    gamma = prepped["gamma"]   # [1, H]
    beta = prepped["beta"]     # [1, H]

    tm = _pick_row_tile(N)
    n_blocks = pl.cdiv(N, tm)
    n_pad = n_blocks * tm
    if n_pad != N:
        # Pad rows so every grid block is full; LayerNorm is per-row so padded
        # rows are independent garbage that we slice away afterwards.
        x = jnp.pad(x, ((0, n_pad - N), (0, 0)))
        res = jnp.pad(res, ((0, n_pad - N), (0, 0)))

    resident = dict(pipeline_mode=pl.Buffered(1))  # no double-buffer for constants

    bytes_accessed = (
        n_pad * I * x.dtype.itemsize          # activations in
        + n_pad * H * res.dtype.itemsize      # residual in
        + n_pad * H * input_tensor.dtype.itemsize  # output
        + I * H * w_t.dtype.itemsize          # weight (read once, resident)
        + 3 * H * b.dtype.itemsize            # bias / gamma / beta
    )
    cost = pl.CostEstimate(
        flops=2 * n_pad * I * H,
        bytes_accessed=int(bytes_accessed),
        transcendentals=0,
    )

    out = pl.pallas_call(
        _bert_output_kernel,
        out_shape=jax.ShapeDtypeStruct((n_pad, H), input_tensor.dtype),
        grid_spec=pltpu.PrefetchScalarGridSpec(
            num_scalar_prefetch=0,
            grid=(n_blocks,),
            in_specs=[
                pl.BlockSpec((tm, I), lambda i: (i, 0)),   # activations, streamed
                pl.BlockSpec((tm, H), lambda i: (i, 0)),   # residual, streamed
                pl.BlockSpec((I, H), lambda i: (0, 0), **resident),   # weight
                pl.BlockSpec((1, H), lambda i: (0, 0), **resident),   # bias
                pl.BlockSpec((1, H), lambda i: (0, 0), **resident),   # gamma
                pl.BlockSpec((1, H), lambda i: (0, 0), **resident),   # beta
            ],
            out_specs=pl.BlockSpec((tm, H), lambda i: (i, 0)),
        ),
        compiler_params=pltpu.CompilerParams(
            dimension_semantics=("parallel",),
            vmem_limit_bytes=_vmem_limit_bytes(),
        ),
        cost_estimate=cost,
    )(x, res, w_t, b, gamma, beta)

    if n_pad != N:
        out = out[:N]
    return out.reshape(B, S, H)


def _reference(hidden_states, input_tensor, params):
    """Pure-JAX mirror of the PyTorch BertOutput forward (eval mode)."""
    x = hidden_states.astype(jnp.float32)
    h = x @ params["dense_w"].T.astype(jnp.float32) + params["dense_b"].astype(jnp.float32)
    h = h + input_tensor.astype(jnp.float32)
    mu = jnp.mean(h, axis=-1, keepdims=True)
    var = jnp.mean((h - mu) ** 2, axis=-1, keepdims=True)
    h = (h - mu) / jnp.sqrt(var + 1e-12)
    h = h * params["ln_gamma"].astype(jnp.float32) + params["ln_beta"].astype(jnp.float32)
    return h.astype(input_tensor.dtype)


if __name__ == "__main__":
    # Small config: batch=2, seq=8, hidden=32, intermediate=128 (4*hidden)
    B, S, H, I = 2, 8, 32, 128

    key = jax.random.PRNGKey(0)
    k_x, k_res, k_w, k_b, k_g, k_beta = jax.random.split(key, 6)

    hidden_states = jax.random.normal(k_x, (B, S, I), dtype=jnp.float32)
    input_tensor = jax.random.normal(k_res, (B, S, H), dtype=jnp.float32)

    params = {
        "dense_w": jax.random.normal(k_w, (H, I), dtype=jnp.float32) * 0.05,  # nn.Linear(I, H).weight
        "dense_b": jax.random.normal(k_b, (H,), dtype=jnp.float32) * 0.01,
        "ln_gamma": jnp.ones((H,), dtype=jnp.float32)
        + 0.01 * jax.random.normal(k_g, (H,), dtype=jnp.float32),
        "ln_beta": 0.01 * jax.random.normal(k_beta, (H,), dtype=jnp.float32),
    }

    ref = _reference(hidden_states, input_tensor, params)

    # 1) Exact-dtype path (f32 operands): tight check against the reference.
    prepped_f32 = prepare_bert_output_params(params, matmul_dtype=None)
    out = jax.block_until_ready(bert_output(hidden_states, input_tensor, prepped_f32))
    assert out.shape == (B, S, H), out.shape
    assert jnp.allclose(out, ref, atol=1e-4, rtol=1e-4), float(jnp.max(jnp.abs(out - ref)))

    # 2) bf16-MXU path (weight prepped in bf16, f32 accumulation): loose check.
    prepped_bf16 = prepare_bert_output_params(params, matmul_dtype=jnp.bfloat16)
    out_bf16 = jax.block_until_ready(bert_output(hidden_states, input_tensor, prepped_bf16))
    assert out_bf16.shape == (B, S, H), out_bf16.shape
    assert jnp.allclose(out_bf16, ref, atol=5e-2, rtol=5e-2), float(
        jnp.max(jnp.abs(out_bf16 - ref))
    )

    print("KERNEL_OK")
</pallas_src>

<mosaic_0001>
module attributes {stable_mosaic.version = 11 : i64} {
  func.func @_bert_output_kernel(%arg0: i32, %arg1: memref<8x128xf32, #tpu.memory_space<vmem>>, %arg2: memref<8x32xf32, #tpu.memory_space<vmem>>, %arg3: memref<128x32xf32, #tpu.memory_space<vmem>>, %arg4: memref<1x32xf32, #tpu.memory_space<vmem>>, %arg5: memref<1x32xf32, #tpu.memory_space<vmem>>, %arg6: memref<1x32xf32, #tpu.memory_space<vmem>>, %arg7: memref<8x32xf32, #tpu.memory_space<vmem>>) attributes {dimension_semantics = [#tpu.dimension_semantics<parallel>], iteration_bounds = array<i64: 2>, scalar_prefetch = 0 : i64, scratch_operands = 0 : i64, tpu.core_type = #tpu.core_type<tc>, window_params = [{transform_indices = @transform_0, window_bounds = array<i64: 8, 128>}, {transform_indices = @transform_1, window_bounds = array<i64: 8, 32>}, {pipeline_mode = #tpu.pipeline_mode<synchronous>, transform_indices = @transform_2, window_bounds = array<i64: 128, 32>}, {pipeline_mode = #tpu.pipeline_mode<synchronous>, transform_indices = @transform_3, window_bounds = array<i64: 1, 32>}, {pipeline_mode = #tpu.pipeline_mode<synchronous>, transform_indices = @transform_4, window_bounds = array<i64: 1, 32>}, {pipeline_mode = #tpu.pipeline_mode<synchronous>, transform_indices = @transform_5, window_bounds = array<i64: 1, 32>}, {transform_indices = @transform_6, window_bounds = array<i64: 8, 32>}]} {
    %c0 = arith.constant 0 : index
    %c0_0 = arith.constant 0 : index
    %0 = vector.load %arg1[%c0, %c0_0] : memref<8x128xf32, #tpu.memory_space<vmem>>, vector<8x128xf32>
    %c0_1 = arith.constant 0 : index
    %c0_2 = arith.constant 0 : index
    %1 = vector.load %arg3[%c0_1, %c0_2] : memref<128x32xf32, #tpu.memory_space<vmem>>, vector<128x32xf32>
    %cst = arith.constant dense<0.000000e+00> : vector<8x32xf32>
    %2 = tpu.matmul %0, %1, %cst {dimension_numbers = #tpu.dot_dimension_numbers<[1], [0], [0], [1], [0, 0, 1, 1], [], []>} : vector<8x128xf32>, vector<128x32xf32>, vector<8x32xf32> -> vector<8x32xf32>
    %c0_3 = arith.constant 0 : index
    %c0_4 = arith.constant 0 : index
    %3 = vector.load %arg4[%c0_3, %c0_4] : memref<1x32xf32, #tpu.memory_space<vmem>>, vector<1x32xf32>
    %4 = vector.broadcast %3 : vector<1x32xf32> to vector<8x32xf32>
    %5 = arith.addf %2, %4 : vector<8x32xf32>
    %c0_5 = arith.constant 0 : index
    %c0_6 = arith.constant 0 : index
    %6 = vector.load %arg2[%c0_5, %c0_6] : memref<8x32xf32, #tpu.memory_space<vmem>>, vector<8x32xf32>
    %7 = arith.addf %5, %6 : vector<8x32xf32>
    %cst_7 = arith.constant dense<0.000000e+00> : vector<8xf32>
    %8 = vector.multi_reduction <add>, %7, %cst_7 [1] : vector<8x32xf32> to vector<8xf32>
    %9 = vector.shape_cast %8 : vector<8xf32> to vector<8x1xf32>
    %cst_8 = arith.constant 3.200000e+01 : f32
    %10 = vector.broadcast %cst_8 : f32 to vector<8x1xf32>
    %11 = arith.divf %9, %10 : vector<8x1xf32>
    %12 = vector.broadcast %11 : vector<8x1xf32> to vector<8x32xf32>
    %13 = arith.subf %7, %12 : vector<8x32xf32>
    %14 = arith.mulf %13, %13 : vector<8x32xf32>
    %cst_9 = arith.constant dense<0.000000e+00> : vector<8xf32>
    %15 = vector.multi_reduction <add>, %14, %cst_9 [1] : vector<8x32xf32> to vector<8xf32>
    %16 = vector.shape_cast %15 : vector<8xf32> to vector<8x1xf32>
    %cst_10 = arith.constant 3.200000e+01 : f32
    %17 = vector.broadcast %cst_10 : f32 to vector<8x1xf32>
    %18 = arith.divf %16, %17 : vector<8x1xf32>
    %cst_11 = arith.constant 9.99999996E-13 : f32
    %19 = vector.broadcast %cst_11 : f32 to vector<8x1xf32>
    %20 = arith.addf %18, %19 : vector<8x1xf32>
    %21 = math.rsqrt %20 : vector<8x1xf32>
    %22 = vector.broadcast %21 : vector<8x1xf32> to vector<8x32xf32>
    %23 = arith.mulf %13, %22 : vector<8x32xf32>
    %c0_12 = arith.constant 0 : index
    %c0_13 = arith.constant 0 : index
    %24 = vector.load %arg5[%c0_12, %c0_13] : memref<1x32xf32, #tpu.memory_space<vmem>>, vector<1x32xf32>
    %25 = vector.broadcast %24 : vector<1x32xf32> to vector<8x32xf32>
    %26 = arith.mulf %23, %25 : vector<8x32xf32>
    %c0_14 = arith.constant 0 : index
    %c0_15 = arith.constant 0 : index
    %27 = vector.load %arg6[%c0_14, %c0_15] : memref<1x32xf32, #tpu.memory_space<vmem>>, vector<1x32xf32>
    %28 = vector.broadcast %27 : vector<1x32xf32> to vector<8x32xf32>
    %29 = arith.addf %26, %28 : vector<8x32xf32>
    %c0_16 = arith.constant 0 : index
    %c0_17 = arith.constant 0 : index
    %30 = vector.load %arg7[%c0_16, %c0_17] : memref<8x32xf32, #tpu.memory_space<vmem>>, vector<8x32xf32>
    tpu.vector_store %arg7[%c0_16, %c0_17], %29 {strides = array<i32>} : memref<8x32xf32, #tpu.memory_space<vmem>>, vector<8x32xf32>,
    return
  }
  func.func @transform_0(%arg0: i32) -> (i32, i32) {
    %c0_i32 = arith.constant 0 : i32
    %c0_i32_0 = arith.constant 0 : i32
    return %arg0, %c0_i32 : i32, i32
  }
  func.func @transform_1(%arg0: i32) -> (i32, i32) {
    %c0_i32 = arith.constant 0 : i32
    %c0_i32_0 = arith.constant 0 : i32
    return %arg0, %c0_i32 : i32, i32
  }
  func.func @transform_2(%arg0: i32) -> (i32, i32) {
    %c0_i32 = arith.constant 0 : i32
    %c0_i32_0 = arith.constant 0 : i32
    %c0_i32_1 = arith.constant 0 : i32
    return %c0_i32, %c0_i32_0 : i32, i32
  }
  func.func @transform_3(%arg0: i32) -> (i32, i32) {
    %c0_i32 = arith.constant 0 : i32
    %c0_i32_0 = arith.constant 0 : i32
    %c0_i32_1 = arith.constant 0 : i32
    return %c0_i32, %c0_i32_0 : i32, i32
  }
  func.func @transform_4(%arg0: i32) -> (i32, i32) {
    %c0_i32 = arith.constant 0 : i32
    %c0_i32_0 = arith.constant 0 : i32
    %c0_i32_1 = arith.constant 0 : i32
    return %c0_i32, %c0_i32_0 : i32, i32
  }
  func.func @transform_5(%arg0: i32) -> (i32, i32) {
    %c0_i32 = arith.constant 0 : i32
    %c0_i32_0 = arith.constant 0 : i32
    %c0_i32_1 = arith.constant 0 : i32
    return %c0_i32, %c0_i32_0 : i32, i32
  }
  func.func @transform_6(%arg0: i32) -> (i32, i32) {
    %c0_i32 = arith.constant 0 : i32
    %c0_i32_0 = arith.constant 0 : i32
    return %arg0, %c0_i32 : i32, i32
  }
}

</mosaic_0001>

<bundles_post_ra>
// kernel: tpu_custom_call.1
= control target key start
LH: loop header
LB: loop body
LE: loop exit
PB: predicated region body
PF: predicated region fallthrough
CT: control target
= control target key end

     0   :  { %11 = vsyncpa [#allocation3], 0  ;;  %s836_s0 = inlined_call_operand.vmem [shape: f32[16,128], index: 0, kind: input, shape index: {}]   ;;  %s837_s1 = inlined_call_operand.vmem [shape: f32[16,32], index: 1, kind: input, shape index: {}]   ;;  %s838_s2 = inlined_call_operand.vmem [shape: f32[128,32], index: 2, kind: input, shape index: {}]   ;;  %s839_s3 = inlined_call_operand.vmem [shape: f32[1,32], index: 3, kind: input, shape index: {}]   ;;  %s840_s4 = inlined_call_operand.vmem [shape: f32[1,32], index: 4, kind: input, shape index: {}]   ;;  %s841_s5 = inlined_call_operand.vmem [shape: f32[1,32], index: 5, kind: input, shape index: {}]   ;;  %s842_s6 = inlined_call_operand.hbm [shape: f32[16,32], index: 6, kind: output, shape index: {}]  }
   0x1   :  { %13 = vsyncpa [#allocation3 + $0x1], 0  ;;  %s686_s21 = smov 0   ;;  %s688_s22 = smov 0  }
   0x2   :  { %s690_s23 = smov 0   ;;  %s692_s24 = smov 0  }
   0x3 LB: > { %s707_s25 = sadd.s32 4294967295, %s646_s24   ;;  %s477_s26 = sadd.s32 4294967294, %s646_s24   ;;  %s646_s24 = sphi %s692_s24, %s848_s24   ;;  %s642_s23 = sphi %s690_s23, %s847_s23   ;;  %s638_s22 = sphi %s688_s22, %s846_s22   ;;  %s634_s21 = sphi %s686_s21, %s845_s21  }
   0x4   : > { %s711_s27 = sadd.s32 1, %s646_s24   ;;  %s162_s28 = sadd.s32 1, %s642_s23 }
   0x5   : > { %s159_s29 = ssub.s32 %s646_s24, %s711_s27  ;;  %p172_p0 = scmp.ne.s32.totalorder %s642_s23, %s638_s22 }
   0x6   : > { %p160_p1 = scmp.eq.s32.totalorder %s159_s29, 0  ;;  %p173_p2 = scmp.eq.s32.totalorder %s707_s25, 1 }
   0x7   : > { %p178_p3 = scmp.ne.s32.totalorder %s638_s22, %s634_s21  ;;  %p179_p4 = scmp.eq.s32.totalorder %s477_s26, 1 }
   0x8   : > { %s722_s30 = scalar_select %p160_p1, %s642_s23, %s162_s28  }
   0x9   : > { %p724_p5 = por %p173_p2, %p172_p0  ;;  %p728_p6 = por %p179_p4, %p178_p3 }
   0xa   : > { %p480_p7 = scmp.ge.s32.totalorder %s646_s24, 1  ;;  %p223_p8 = scmp.lt.s32.totalorder %s646_s24, 3 }
   0xc   : > { %p224_p9 = pnand %p480_p7, %p223_p8 }
   0xd   : > { %p256_p10 = scmp.lt.s32.totalorder (!%p224_p9), %s707_s25, 1  ;;  %s488_s12 = sshll.u32 (!%p224_p9), %s707_s25, 7 }
   0xe   : > { %227 = sbr.rel (%p224_p9) target bundleno = 570 (0x23a), region = 44  ;;  %s404_s17 = scalar_lea.hbm (!%p224_p9), %s842_s6, %s488_s12 }
   0xf   : > { %s650_s20 = smov (!%p224_p9), [#allocation2]  }
  0x10   : > { %s590_s29 = sshll.u32 (!%p224_p9), %s650_s20, 4  ;;  %s591_s29 = int_to_ptr.vmem [resolvable:$false] %s590_s29 }
  0x13   : > { %v280_v0 = vld [vmem:[%s838_s2 + $0x78] sm:$0xff]  ;;  %v648_v1 = vmov 0.0   ;;  %v279_v2 = vld [vmem:[%s838_s2 + $0x70] sm:$0xff]  ;;  %vm649_vm0 = vmmov 0   ;;  %v278_v3 = vld [vmem:[%s838_s2 + $0x68] sm:$0xff]  ;;  %s257_s16 = scalar_select %p256_p10, %s707_s25, 1 }
  0x14   : > { %508 = vmatprep.subr.mxu0 %v648_v1  ;;  %540 = vmatprep.mubr.msk.f32.mxu0 %vm649_vm0, %v648_v1  ;;  %v277_v4 = vld [vmem:[%s838_s2 + $0x60] sm:$0xff]  ;;  %v276_v5 = vld [vmem:[%s838_s2 + $0x58] sm:$0xff]  ;;  %v275_v6 = vld [vmem:[%s838_s2 + $0x50] sm:$0xff]  ;;  %vm360_vm1 = vcmask 261120   ;;  %s592_s25 = scalar_lea.vmem %s591_s29, 256 }
  0x15   : > { %509 = vmatpush3.msra.mxu0 %v280_v0  ;;  %v274_v7 = vld [vmem:[%s838_s2 + $0x48] sm:$0xff]  ;;  %v273_v8 = vld [vmem:[%s838_s2 + $0x40] sm:$0xff]  ;;  %v272_v9 = vld [vmem:[%s838_s2 + $0x38] sm:$0xff]  ;;  %s482_s26 = sshll.u32 %s257_s16, 3 }
  0x16   : > { %510 = vmatprep.subr.mxu0 %v648_v1  ;;  %v271_v10 = vld [vmem:[%s838_s2 + $0x30] sm:$0xff]  ;;  %v270_v11 = vld [vmem:[%s838_s2 + $0x28] sm:$0xff]  ;;  %v269_v12 = vld [vmem:[%s838_s2 + $0x20] sm:$0xff]  ;;  %s259_s13 = scalar_lea.vmem %s836_s0, %s482_s26  ;;  %s263_s18 = scalar_lea.vmem %s837_s1, %s482_s26 }
  0x17   : > { %511 = vmatpush3.msra.mxu0 %v279_v2  ;;  %v268_v13 = vld [vmem:[%s838_s2 + $0x18] sm:$0xff]  ;;  %v267_v14 = vld [vmem:[%s838_s2 + $0x10] sm:$0xff]  ;;  %v266_v15 = vld [vmem:[%s838_s2 + $0x8] sm:$0xff]  ;;  %s253_s26 = sand.u32 1, %s638_s22  }
  0x18   : > { %512 = vmatprep.subr.mxu0 %v648_v1  ;;  %v265_v16 = vld [vmem:[%s838_s2] sm:$0xff]  ;;  %s481_s28 = sshll.u32 %s253_s26, 3 }
  0x19   : > { %513 = vmatpush3.msra.mxu0 %v278_v3  ;;  %v264_v17 = vld [vmem:[%s259_s13] sm:$0xff]  ;;  %s255_s13 = scalar_lea.vmem [#allocation2], %s481_s28 }
  0x1a   : > { %514 = vmatprep.subr.mxu0 %v648_v1  ;;  %v484_v18 = vld [vmem:[%s839_s3] ss:$0 sm:$0xff]  ;;  %s406_s14 = sshll.u32 %s255_s13, 4  ;;  %s407_s14 = int_to_ptr.vmem [resolvable:$true] %s406_s14 }
  0x1b   : > { %515 = vmatpush3.msra.mxu0 %v277_v4  ;;  %v358_v20 = vld [vmem:[%s263_s18] sm:$0xff]  ;;  %s393_s18 = scalar_lea.sflag [#allocation3], %s253_s26  ;;  %s586_s19 = scalar_lea.vmem %s407_s14, 128 }
  0x1c   : > { %516 = vmatprep.subr.mxu0 %v648_v1  ;;  %v485_v34 = vld [vmem:[%s840_s4] ss:$0 sm:$0xff]  ;;  %p587_p11 = scmp.ne.s32.totalorder %s407_s14, %s586_s19  ;;  %p593_p0 = scmp.lt.s32.totalorder %s407_s14, %s591_s29 }
  0x1d   : > { %517 = vmatpush3.msra.mxu0 %v276_v5  ;;  %v486_v36 = vld [vmem:[%s841_s5] ss:$0 sm:$0xff]  ;;  %p594_p1 = scmp.lt.s32.totalorder %s592_s25, %s586_s19 }
  0x1e   : > { %518 = vmatprep.subr.mxu0 %v648_v1  ;;  %p588_p12 = pnand %p587_p11, %p724_p5 }
  0x1f   : > { %519 = vmatpush3.msra.mxu0 %v275_v6  ;;  %p595_p2 = por %p594_p1, %p593_p0 }
  0x20   : > { %520 = vmatprep.subr.mxu0 %v648_v1  ;;  %p589_p13 = pneg %p588_p12 }
  0x21   : > { %521 = vmatpush3.msra.mxu0 %v274_v7 }
  0x22   : > { %522 = vmatprep.subr.mxu0 %v648_v1  ;;  %p596_p3 = pnand %p595_p2, %p589_p13 }
  0x23   : > { %523 = vmatpush3.msra.mxu0 %v273_v8 }
  0x24   : > { %524 = vmatprep.subr.mxu0 %v648_v1 }
  0x25   : > { %525 = vmatpush3.msra.mxu0 %v272_v9 }
  0x26   : > { %526 = vmatprep.subr.mxu0 %v648_v1 }
  0x27   : > { %527 = vmatpush3.msra.mxu0 %v271_v10 }
  0x28   : > { %528 = vmatprep.subr.mxu0 %v648_v1 }
  0x29   : > { %529 = vmatpush3.msra.mxu0 %v270_v11 }
  0x2a   : > { %530 = vmatprep.subr.mxu0 %v648_v1 }
  0x2b   : > { %531 = vmatpush3.msra.mxu0 %v269_v12 }
  0x2c   : > { %532 = vmatprep.subr.mxu0 %v648_v1 }
  0x2d   : > { %533 = vmatpush3.msra.mxu0 %v268_v13 }
  0x2e   : > { %534 = vmatprep.subr.mxu0 %v648_v1 }
  0x2f   : > { %535 = vmatpush3.msra.mxu0 %v267_v14 }
  0x30   : > { %536 = vmatprep.subr.mxu0 %v648_v1 }
  0x31   : > { %537 = vmatpush3.msra.mxu0 %v266_v15 }
  0x32   : > { %538 = vmatprep.subr.mxu0 %v648_v1 }
  0x33   : > { %539 = vmatpush3.msra.mxu0 %v265_v16 }
  0x34   : > { %541 = vmatmul.mubr.f32.vlgmr.msra.gmra.mxu0 %v264_v17 }
  0xf4   : > { %v354_v19 = vpop.f32.mrf.mxu0 }
  0xf5   : > { %v355_v21 = vadd.f32 %v484_v18, %v354_v19 }
  0xf6   : > { %v542_v22 = vpop.f32.mrf.mxu0 }
  0xf7   : > { %v359_v23 = vadd.f32 %v358_v20, %v355_v21 }
  0xf9   : > { %v361_v24 = vsel %vm360_vm1, %v359_v23, 0.0 }
  0xfa   : > { %362 = vadd.xlane.f32.xlu0 %v361_v24 }
 0x183   : > { %v363_v25 = vpop.xlane.xlu0 %362 }
 0x184   : > { %v365_v26 = vmul.f32 0.03125, %v363_v25 }
 0x186   : > { %v366_v27 = vsub.f32 %v359_v23, %v365_v26 }
 0x188   : > { %v367_v28 = vmul.f32 %v366_v27, %v366_v27 }
 0x18a   : > { %v368_v29 = vsel %vm360_vm1, %v367_v28, 0.0 }
 0x18b   : > { %369 = vadd.xlane.f32.xlu0 %v368_v29 }
 0x214   : > { %v370_v30 = vpop.xlane.xlu0 %369 }
 0x215   : > { %v371_v31 = vmul.f32 0.03125, %v370_v30 }
 0x217   : > { %v372_v32 = vadd.f32 1e-12, %v371_v31 }
 0x219   : > { %584 = vrsqrt.f32 %v372_v32 }
 0x226   : > { %v585_v33 = vpop.eup %584 }
 0x227   : > { %v374_v35 = vmul.f32 %v585_v33, %v366_v27 }
 0x229   : > { %v382_v37 = vmul.f32 %v485_v34, %v374_v35 }
 0x22b   : > { %v390_v38 = vadd.f32 %v486_v36, %v382_v37 }
 0x22d   : > { %391 = vst.msk [vmem:[%s255_s13] sm:$0xff] %vm360_vm1, %v390_v38 }
 0x22e   : > { %599 = shalt.err (!%p596_p3)
}
 0x22f   : > { %s600_s28 = scalar_lea.hbm %s404_s17, 128  ;;  %s604_s10 = scalar_lea.hbm %s842_s6, 256 }
 0x230   : > { %p601_p4 = scmp.ne.s32.totalorder %s404_s17, %s600_s28  ;;  %p605_p9 = scmp.lt.s32.totalorder %s404_s17, %s842_s6 }
 0x231   : > { %p606_p10 = scmp.lt.s32.totalorder %s604_s10, %s600_s28 }
 0x232   : > { %p602_p7 = pnand %p601_p4, %p724_p5 }
 0x233   : > { %p607_p11 = por %p606_p10, %p605_p9 }
 0x234   : > { %p603_p8 = pneg %p602_p7 }
 0x236   : > { %p608_p12 = pnand %p607_p11, %p603_p8 }
 0x238   : > { %611 = shalt.err (!%p608_p12)
}
 0x239   : > { %543 = dma.vmem_to_hbm [thread:$0]  (%p724_p5), %s407_s14, 128, %s404_s17, %s393_s18  }
 0x23a PF: > { %p549_p13 = scmp.ge.s32.totalorder %s646_s24, 2  ;;  %s418_s13 = sand.u32 1, %s634_s21  }
 0x23b   : > { %s419_s15 = scalar_lea.sflag [#allocation3], %s418_s13 }
 0x23c   : > { %p546_p0 = pnand %p549_p13, %p728_p6 }
 0x23e   : > { %p547_p1 = pneg %p546_p0 }
 0x240   : > { %629 = dma.done.wait (%p547_p1), %s419_s15, 128  }
 0x241   : > { %631 = vsyncadd (%p547_p1), %s419_s15, 4294967168  ;;  %p16_p2 = scmp.ge.s32.totalorder %s711_s27, 4   ;;  %s845_s21 = smov %s638_s22 }
 0x242   : > { %s846_s22 = smov %s642_s23  ;;  %s847_s23 = smov %s722_s30 }
 0x243   : > { %s848_s24 = smov %s711_s27  ;;  %18 = sbr.rel (!%p16_p2) target bundleno = 3 (0x3), region = 82 }
 0x248   :  { %424 = vsyncpa [#allocation3], 1 }
 0x249   :  { %426 = vsyncpa [#allocation3 + $0x1], 1 }

</bundles_post_ra>
